<compile_context>
chip_gen: v7x
topology: tpu7x:2x2x1
jax: 0.10.0
libtpu: 0.0.40
codegen_flags: <defaults>
</compile_context>

<pallas_src>
import functools

import jax
import jax.numpy as jnp
from jax.experimental import pallas as pl
from jax.experimental.pallas import tpu as pltpu

STATE_DIM = 4
HIDDEN = 100
ACTION_N = 2

HIDDEN_PAD = 128   # lane-dense hidden width (100 -> 128, zero-padded)
OUT_PAD = 8        # narrow padded output width (2 -> 8): 16x less HBM writeback than 128


def _round_up(x, m):
    return (x + m - 1) // m * m


def cem_forward_kernel(x_ref, w1_ref, b1_ref, w2_ref, b2_ref, o_ref):
    x = x_ref[...]                                      # [tb, STATE_DIM]   f32
    w1 = w1_ref[...]                                    # [STATE_DIM, HIDDEN_PAD]

    # Layer 1 on the VPU: K=4 contraction as 4 broadcast multiply-adds.
    # (An MXU matmul here would use <4% of the systolic K dim; MXU handles layer 2.)
    h = b1_ref[...] + x[:, 0:1] * w1[0:1, :]            # [tb, HIDDEN_PAD]
    for k in range(1, STATE_DIM):
        h = h + x[:, k:k + 1] * w1[k:k + 1, :]
    h = jnp.maximum(h, 0.0)                              # ReLU

    # Layer 2 on the MXU: [tb,128] @ [128,8] (zero-padded), narrow output store.
    logits = jnp.dot(h, w2_ref[...], preferred_element_type=jnp.float32)
    o_ref[...] = (logits + b2_ref[...]).astype(o_ref.dtype)


def prepare_params(w1, b1, w2, b2):
    """Pad params to the kernel layout ONCE (at init / after each optimizer step).

    Extra hidden columns / output columns are zero, so they contribute exactly 0.
    """
    w1p = jnp.zeros((STATE_DIM, HIDDEN_PAD), jnp.float32).at[:, :HIDDEN].set(
        jnp.asarray(w1, jnp.float32))
    b1p = jnp.zeros((1, HIDDEN_PAD), jnp.float32).at[:, :HIDDEN].set(
        jnp.asarray(b1, jnp.float32).reshape(1, HIDDEN))
    w2p = jnp.zeros((HIDDEN_PAD, OUT_PAD), jnp.float32).at[:HIDDEN, :ACTION_N].set(
        jnp.asarray(w2, jnp.float32))
    b2p = jnp.zeros((1, OUT_PAD), jnp.float32).at[:, :ACTION_N].set(
        jnp.asarray(b2, jnp.float32).reshape(1, ACTION_N))
    return w1p, b1p, w2p, b2p


@functools.partial(jax.jit, static_argnames=("tile_b",))
def cem_forward(x, w1p, b1p, w2p, b2p, *, tile_b=2048):
    """x: [B, STATE_DIM] -> logits [B, ACTION_N] f32. Params must be pre-padded
    with prepare_params()."""
    B = x.shape[0]

    # Force the tile to a multiple of 8 (sublane divisibility requirement).
    tile_b = max(8, (tile_b // 8) * 8)

    b8 = _round_up(B, 8)
    tb = min(tile_b, b8)
    # v7x megacore: for mid/large batches keep >= 2 grid steps so the "parallel"
    # batch axis shards across both TensorCores (harmless on v5e/v6e: single TC).
    if b8 >= 256 and tb >= b8:
        tb = _round_up(pl.cdiv(b8, 2), 8)

    b_pad = _round_up(B, tb)
    xf = x.astype(jnp.float32)
    xp = xf if b_pad == B else jnp.pad(xf, ((0, b_pad - B), (0, 0)))

    grid = (b_pad // tb,)

    cost = pl.CostEstimate(
        flops=2 * b_pad * (STATE_DIM * HIDDEN_PAD + HIDDEN_PAD * OUT_PAD),
        transcendentals=0,
        bytes_accessed=4 * (xp.size + b_pad * OUT_PAD
                            + w1p.size + b1p.size + w2p.size + b2p.size),
    )

    out_padded = pl.pallas_call(
        cem_forward_kernel,
        out_shape=jax.ShapeDtypeStruct((b_pad, OUT_PAD), jnp.float32),
        grid=grid,
        in_specs=[
            # x: tiled along batch, feature dim whole.
            pl.BlockSpec((tb, STATE_DIM), lambda i: (i, 0)),
            # Weights/biases: full-array blocks, same block each step -> VMEM-resident.
            pl.BlockSpec((STATE_DIM, HIDDEN_PAD), lambda i: (0, 0)),
            pl.BlockSpec((1, HIDDEN_PAD), lambda i: (0, 0)),
            pl.BlockSpec((HIDDEN_PAD, OUT_PAD), lambda i: (0, 0)),
            pl.BlockSpec((1, OUT_PAD), lambda i: (0, 0)),
        ],
        out_specs=pl.BlockSpec((tb, OUT_PAD), lambda i: (i, 0)),
        compiler_params=pltpu.CompilerParams(
            dimension_semantics=("parallel",),
        ),
        cost_estimate=cost,
    )(xp, w1p, b1p, w2p, b2p)

    # Strip batch padding and lane padding (only first ACTION_N columns are real logits).
    return out_padded[:B, :ACTION_N]


def init_params(key):
    """Deterministic init matching PyTorch nn.Linear default (U[-1/sqrt(fan_in), 1/sqrt(fan_in)])."""
    k1, k2, k3, k4 = jax.random.split(key, 4)
    bound1 = 1.0 / jnp.sqrt(STATE_DIM)
    bound2 = 1.0 / jnp.sqrt(HIDDEN)
    w1 = jax.random.uniform(k1, (STATE_DIM, HIDDEN), jnp.float32, -bound1, bound1)
    b1 = jax.random.uniform(k2, (1, HIDDEN), jnp.float32, -bound1, bound1)
    w2 = jax.random.uniform(k3, (HIDDEN, ACTION_N), jnp.float32, -bound2, bound2)
    b2 = jax.random.uniform(k4, (1, ACTION_N), jnp.float32, -bound2, bound2)
    return w1, b1, w2, b2


def reference_forward(x, w1, b1, w2, b2):
    h = jnp.maximum(x @ w1 + b1, 0.0)
    return h @ w2 + b2


if __name__ == "__main__":
    key = jax.random.PRNGKey(0)
    kx1, kx2, kp = jax.random.split(key, 3)
    w1, b1, w2, b2 = init_params(kp)

    # Pad params once, outside the per-call forward.
    w1p, b1p, w2p, b2p = prepare_params(w1, b1, w2, b2)

    # Small batch (single grid step) — get_action-style usage.
    x_small = jax.random.normal(kx1, (8, STATE_DIM), jnp.float32)
    logits_small = jax.block_until_ready(cem_forward(x_small, w1p, b1p, w2p, b2p))
    ref_small = reference_forward(x_small, w1, b1, w2, b2)
    assert logits_small.shape == (8, ACTION_N)
    assert jnp.allclose(logits_small, ref_small, atol=1e-4, rtol=1e-5)

    # Larger, ragged batch (multi-step pipelined grid + batch padding) — update_policy-style usage.
    x_big = jax.random.normal(kx2, (1037, STATE_DIM), jnp.float32)
    logits_big = jax.block_until_ready(cem_forward(x_big, w1p, b1p, w2p, b2p))
    ref_big = reference_forward(x_big, w1, b1, w2, b2)
    assert logits_big.shape == (1037, ACTION_N)
    assert jnp.allclose(logits_big, ref_big, atol=1e-4, rtol=1e-5)

    print("KERNEL_OK")
</pallas_src>

<mosaic_0001>
module attributes {stable_mosaic.version = 11 : i64} {
  func.func @cem_forward_kernel(%arg0: i32, %arg1: memref<8x4xf32, #tpu.memory_space<vmem>>, %arg2: memref<4x128xf32, #tpu.memory_space<vmem>>, %arg3: memref<1x128xf32, #tpu.memory_space<vmem>>, %arg4: memref<128x8xf32, #tpu.memory_space<vmem>>, %arg5: memref<1x8xf32, #tpu.memory_space<vmem>>, %arg6: memref<8x8xf32, #tpu.memory_space<vmem>>) attributes {dimension_semantics = [#tpu.dimension_semantics<parallel>], iteration_bounds = array<i64: 1>, scalar_prefetch = 0 : i64, scratch_operands = 0 : i64, tpu.core_type = #tpu.core_type<tc>, window_params = [{transform_indices = @transform_0, window_bounds = array<i64: 8, 4>}, {pipeline_mode = #tpu.pipeline_mode<synchronous>, transform_indices = @transform_1, window_bounds = array<i64: 4, 128>}, {pipeline_mode = #tpu.pipeline_mode<synchronous>, transform_indices = @transform_2, window_bounds = array<i64: 1, 128>}, {pipeline_mode = #tpu.pipeline_mode<synchronous>, transform_indices = @transform_3, window_bounds = array<i64: 128, 8>}, {pipeline_mode = #tpu.pipeline_mode<synchronous>, transform_indices = @transform_4, window_bounds = array<i64: 1, 8>}, {transform_indices = @transform_5, window_bounds = array<i64: 8, 8>}]} {
    %c0 = arith.constant 0 : index
    %c0_0 = arith.constant 0 : index
    %0 = vector.load %arg1[%c0, %c0_0] : memref<8x4xf32, #tpu.memory_space<vmem>>, vector<8x4xf32>
    %c0_1 = arith.constant 0 : index
    %c0_2 = arith.constant 0 : index
    %1 = vector.load %arg2[%c0_1, %c0_2] : memref<4x128xf32, #tpu.memory_space<vmem>>, vector<4x128xf32>
    %c0_3 = arith.constant 0 : index
    %c0_4 = arith.constant 0 : index
    %2 = vector.load %arg3[%c0_3, %c0_4] : memref<1x128xf32, #tpu.memory_space<vmem>>, vector<1x128xf32>
    %3 = vector.extract_strided_slice %0 {offsets = [0, 0], sizes = [8, 1], strides = [1, 1]} : vector<8x4xf32> to vector<8x1xf32>
    %4 = vector.extract_strided_slice %1 {offsets = [0, 0], sizes = [1, 128], strides = [1, 1]} : vector<4x128xf32> to vector<1x128xf32>
    %5 = vector.broadcast %3 : vector<8x1xf32> to vector<8x128xf32>
    %6 = vector.broadcast %4 : vector<1x128xf32> to vector<8x128xf32>
    %7 = arith.mulf %5, %6 : vector<8x128xf32>
    %8 = vector.broadcast %2 : vector<1x128xf32> to vector<8x128xf32>
    %9 = arith.addf %8, %7 : vector<8x128xf32>
    %10 = vector.extract_strided_slice %0 {offsets = [0, 1], sizes = [8, 1], strides = [1, 1]} : vector<8x4xf32> to vector<8x1xf32>
    %11 = vector.extract_strided_slice %1 {offsets = [1, 0], sizes = [1, 128], strides = [1, 1]} : vector<4x128xf32> to vector<1x128xf32>
    %12 = vector.broadcast %10 : vector<8x1xf32> to vector<8x128xf32>
    %13 = vector.broadcast %11 : vector<1x128xf32> to vector<8x128xf32>
    %14 = arith.mulf %12, %13 : vector<8x128xf32>
    %15 = arith.addf %9, %14 : vector<8x128xf32>
    %16 = vector.extract_strided_slice %0 {offsets = [0, 2], sizes = [8, 1], strides = [1, 1]} : vector<8x4xf32> to vector<8x1xf32>
    %17 = vector.extract_strided_slice %1 {offsets = [2, 0], sizes = [1, 128], strides = [1, 1]} : vector<4x128xf32> to vector<1x128xf32>
    %18 = vector.broadcast %16 : vector<8x1xf32> to vector<8x128xf32>
    %19 = vector.broadcast %17 : vector<1x128xf32> to vector<8x128xf32>
    %20 = arith.mulf %18, %19 : vector<8x128xf32>
    %21 = arith.addf %15, %20 : vector<8x128xf32>
    %22 = vector.extract_strided_slice %0 {offsets = [0, 3], sizes = [8, 1], strides = [1, 1]} : vector<8x4xf32> to vector<8x1xf32>
    %23 = vector.extract_strided_slice %1 {offsets = [3, 0], sizes = [1, 128], strides = [1, 1]} : vector<4x128xf32> to vector<1x128xf32>
    %24 = vector.broadcast %22 : vector<8x1xf32> to vector<8x128xf32>
    %25 = vector.broadcast %23 : vector<1x128xf32> to vector<8x128xf32>
    %26 = arith.mulf %24, %25 : vector<8x128xf32>
    %27 = arith.addf %21, %26 : vector<8x128xf32>
    %cst = arith.constant 0.000000e+00 : f32
    %28 = vector.broadcast %cst : f32 to vector<8x128xf32>
    %29 = arith.maximumf %27, %28 : vector<8x128xf32>
    %c0_5 = arith.constant 0 : index
    %c0_6 = arith.constant 0 : index
    %30 = vector.load %arg4[%c0_5, %c0_6] : memref<128x8xf32, #tpu.memory_space<vmem>>, vector<128x8xf32>
    %cst_7 = arith.constant dense<0.000000e+00> : vector<8x8xf32>
    %31 = tpu.matmul %29, %30, %cst_7 {dimension_numbers = #tpu.dot_dimension_numbers<[1], [0], [0], [1], [0, 0, 1, 1], [], []>} : vector<8x128xf32>, vector<128x8xf32>, vector<8x8xf32> -> vector<8x8xf32>
    %c0_8 = arith.constant 0 : index
    %c0_9 = arith.constant 0 : index
    %32 = vector.load %arg5[%c0_8, %c0_9] : memref<1x8xf32, #tpu.memory_space<vmem>>, vector<1x8xf32>
    %33 = vector.broadcast %32 : vector<1x8xf32> to vector<8x8xf32>
    %34 = arith.addf %31, %33 : vector<8x8xf32>
    %c0_10 = arith.constant 0 : index
    %c0_11 = arith.constant 0 : index
    %35 = vector.load %arg6[%c0_10, %c0_11] : memref<8x8xf32, #tpu.memory_space<vmem>>, vector<8x8xf32>
    tpu.vector_store %arg6[%c0_10, %c0_11], %34 {strides = array<i32>} : memref<8x8xf32, #tpu.memory_space<vmem>>, vector<8x8xf32>,
    return
  }
  func.func @transform_0(%arg0: i32) -> (i32, i32) {
    %c0_i32 = arith.constant 0 : i32
    %c0_i32_0 = arith.constant 0 : i32
    return %arg0, %c0_i32 : i32, i32
  }
  func.func @transform_1(%arg0: i32) -> (i32, i32) {
    %c0_i32 = arith.constant 0 : i32
    %c0_i32_0 = arith.constant 0 : i32
    %c0_i32_1 = arith.constant 0 : i32
    return %c0_i32, %c0_i32_0 : i32, i32
  }
  func.func @transform_2(%arg0: i32) -> (i32, i32) {
    %c0_i32 = arith.constant 0 : i32
    %c0_i32_0 = arith.constant 0 : i32
    %c0_i32_1 = arith.constant 0 : i32
    return %c0_i32, %c0_i32_0 : i32, i32
  }
  func.func @transform_3(%arg0: i32) -> (i32, i32) {
    %c0_i32 = arith.constant 0 : i32
    %c0_i32_0 = arith.constant 0 : i32
    %c0_i32_1 = arith.constant 0 : i32
    return %c0_i32, %c0_i32_0 : i32, i32
  }
  func.func @transform_4(%arg0: i32) -> (i32, i32) {
    %c0_i32 = arith.constant 0 : i32
    %c0_i32_0 = arith.constant 0 : i32
    %c0_i32_1 = arith.constant 0 : i32
    return %c0_i32, %c0_i32_0 : i32, i32
  }
  func.func @transform_5(%arg0: i32) -> (i32, i32) {
    %c0_i32 = arith.constant 0 : i32
    %c0_i32_0 = arith.constant 0 : i32
    return %arg0, %c0_i32 : i32, i32
  }
}

</mosaic_0001>

<bundles_post_ra>
// kernel: cem_forward.1
= control target key start
LH: loop header
LB: loop body
LE: loop exit
PB: predicated region body
PF: predicated region fallthrough
CT: control target
= control target key end

     0   :  { %v260_v0 = vmov 0   ;;  %v261_v2 = vmov 2   ;;  %v262_v8 = vmov 0.0|0.0   ;;  %v263_v12 = vmov 1   ;;  %s360_s0 = inlined_call_operand.vmem [shape: f32[8,4], index: 0, kind: input, shape index: {}]   ;;  %s361_s3 = inlined_call_operand.vmem [shape: f32[128,8], index: 3, kind: input, shape index: {}]   ;;  %s362_s1 = inlined_call_operand.vmem [shape: f32[4,128], index: 1, kind: input, shape index: {}]   ;;  %s363_s2 = inlined_call_operand.vmem [shape: f32[1,128], index: 2, kind: input, shape index: {}]   ;;  %s364_s4 = inlined_call_operand.vmem [shape: f32[1,8], index: 4, kind: input, shape index: {}]   ;;  %s365_s5 = inlined_call_operand.vmem [shape: f32[8,8], index: 5, kind: output, shape index: {}]  }
   0x1   :  { %255 = vset.pattern.permute.xlu0 %v260_v0  ;;  %v20_v1 = vld [vmem:[%s360_s0] sm:$0xff]  ;;  %257 = vset.pattern.permute.xlu1 %v261_v2  ;;  %v72_v4 = vld [vmem:[%s361_s3 + $0x8] sm:$0xff]  ;;  %v73_v6 = vld [vmem:[%s361_s3 + $0x10] sm:$0xff]  ;;  %v264_v13 = vmov 3   ;;  %vm265_vm0 = vmmov 0   ;;  %v266_v21 = vmov 0.0   ;;  %v28_v31 = vlaneseq }
   0x2   :  { %v71_v3 = vld [vmem:[%s361_s3] sm:$0xff]  ;;  %25 = vperm.xlu0 %255, %v20_v1   ;;  %51 = vperm.xlu1 %257, %v20_v1   ;;  %v74_v7 = vld [vmem:[%s361_s3 + $0x18] sm:$0xff]  ;;  %v76_v11 = vld [vmem:[%s361_s3 + $0x28] sm:$0xff]  ;;  %vm164_vm1 = vcmask 64512  }
   0x3   :  { %v225_v5 = vpack.c.bf16 %v72_v4, %v71_v3  ;;  %224 = vmatprep.subr.bf16.mxu0 %v262_v8  ;;  %v228_v9 = vpack.c.bf16 %v74_v7, %v73_v6  ;;  %v75_v10 = vld [vmem:[%s361_s3 + $0x20] sm:$0xff]  ;;  %v77_v15 = vld [vmem:[%s361_s3 + $0x30] sm:$0xff]  ;;  %v78_v16 = vld [vmem:[%s361_s3 + $0x38] sm:$0xff]  ;;  %221 = vmatprep.mubr.msk.f32.mxu0 %vm265_vm0, %v266_v21  ;;  %v29_v32 = vshrl.u32 %v28_v31, 7 }
   0x4   :  { %v231_v14 = vpack.c.bf16 %v76_v11, %v75_v10  ;;  %v234_v17 = vpack.c.bf16 %v78_v16, %v77_v15  ;;  %v79_v18 = vld [vmem:[%s361_s3 + $0x40] sm:$0xff]  ;;  %v80_v19 = vld [vmem:[%s361_s3 + $0x48] sm:$0xff]  ;;  %v81_v22 = vld [vmem:[%s361_s3 + $0x50] sm:$0xff] }
   0x5   :  { %226 = vmatpush3.bf16.msra.mxu0 %v225_v5  ;;  %v237_v20 = vpack.c.bf16 %v80_v19, %v79_v18  ;;  %v82_v23 = vld [vmem:[%s361_s3 + $0x58] sm:$0xff]  ;;  %v83_v25 = vld [vmem:[%s361_s3 + $0x60] sm:$0xff]  ;;  %v84_v26 = vld [vmem:[%s361_s3 + $0x68] sm:$0xff]  ;;  %v30_v33 = vsub.s32 0, %v29_v32  ;;  %v46_v36 = vsub.s32 1, %v29_v32  ;;  %v56_v38 = vsub.s32 2, %v29_v32 }
   0x6   :  { %227 = vmatprep.subr.bf16.mxu0 %v262_v8  ;;  %256 = vset.pattern.permute.xlu0 %v263_v12  ;;  %v240_v24 = vpack.c.bf16 %v82_v23, %v81_v22  ;;  %v243_v27 = vpack.c.bf16 %v84_v26, %v83_v25  ;;  %v85_v28 = vld [vmem:[%s361_s3 + $0x70] sm:$0xff]  ;;  %v86_v29 = vld [vmem:[%s361_s3 + $0x78] sm:$0xff]  ;;  %v21_v34 = vld [vmem:[%s362_s1] sm:$0xf]  ;;  %v66_v40 = vsub.s32 3, %v29_v32 }
   0x7   :  { %258 = vset.pattern.permute.xlu1 %v264_v13  ;;  %41 = vperm.xlu0 %256, %v20_v1   ;;  %v246_v30 = vpack.c.bf16 %v86_v29, %v85_v28  ;;  %v31_v35 = vrot.slane %v21_v34, %v30_v33  ;;  %v47_v42 = vrot.slane %v21_v34, %v46_v36  ;;  %v170_v43 = vld [vmem:[%s363_s2] ss:$0 sm:$0xff] }
   0x8   :  { %61 = vperm.xlu1 %258, %v20_v1   ;;  %v57_v44 = vrot.slane %v21_v34, %v56_v38  ;;  %v67_v45 = vrot.slane %v21_v34, %v66_v40  ;;  %v171_v56 = vld [vmem:[%s364_s4] ss:$0 sm:$0xff] }
   0x9   :  { %229 = vmatpush3.bf16.msra.mxu0 %v228_v9 }
   0xa   :  { %230 = vmatprep.subr.bf16.mxu0 %v262_v8 }
   0xb   :  { %259 = vset.pattern.permute.xlu0 %v264_v13 }
   0xd   :  { %232 = vmatpush3.bf16.msra.mxu0 %v231_v14 }
   0xe   :  { %233 = vmatprep.subr.bf16.mxu0 %v262_v8 }
  0x11   :  { %235 = vmatpush3.bf16.msra.mxu0 %v234_v17 }
  0x12   :  { %236 = vmatprep.subr.bf16.mxu0 %v262_v8 }
  0x15   :  { %238 = vmatpush3.bf16.msra.mxu0 %v237_v20 }
  0x16   :  { %239 = vmatprep.subr.bf16.mxu0 %v262_v8 }
  0x19   :  { %241 = vmatpush3.bf16.msra.mxu0 %v240_v24 }
  0x1a   :  { %242 = vmatprep.subr.bf16.mxu0 %v262_v8 }
  0x1d   :  { %244 = vmatpush3.bf16.msra.mxu0 %v243_v27 }
  0x1e   :  { %245 = vmatprep.subr.bf16.mxu0 %v262_v8 }
  0x21   :  { %247 = vmatpush3.bf16.msra.mxu0 %v246_v30 }
  0x81   :  { %v26_v37 = vpop.permute.xlu0 %25  ;;  %v52_v39 = vpop.permute.xlu1 %51 }
  0x82   :  { %v32_v41 = vmul.f32 %v31_v35, %v26_v37  ;;  %v58_v50 = vmul.f32 %v57_v44, %v52_v39 }
  0x84   :  { %v39_v48 = vadd.f32 %v170_v43, %v32_v41 }
  0x86   :  { %v42_v46 = vpop.permute.xlu0 %41 }
  0x87   :  { %v62_v47 = vpop.permute.xlu1 %61  ;;  %v48_v49 = vmul.f32 %v47_v42, %v42_v46 }
  0x88   :  { %v68_v52 = vmul.f32 %v67_v45, %v62_v47 }
  0x89   :  { %v49_v51 = vadd.f32 %v48_v49, %v39_v48 }
  0x8b   :  { %v59_v53 = vadd.f32 %v58_v50, %v49_v51 }
  0x8d   :  { %v69_v54 = vadd.f32 %v68_v52, %v59_v53 }
  0x8f   :  { %v70_v55 = vmax.f32 %v69_v54, 0.0 }
  0x91   :  { %222 = vmatmul.mubr.f32.vlgmr.msra.gmra.mrb[0].mxu0 %v70_v55 }
 0x164   :  { %v160_v57 = vpop.f32.mrb[0].mxu0 }
 0x165   :  { %v161_v58 = vadd.f32 %v171_v56, %v160_v57  ;;  %v223_v59 = vpop.f32.mrb[1].mxu0 }
 0x167   :  { %165 = vst.msk [vmem:[%s365_s5] sm:$0xff] %vm164_vm1, %v161_v58 }

</bundles_post_ra>
